<compile_context>
chip_gen: v7x
topology: tpu7x:2x2x1
jax: 0.10.0
libtpu: 0.0.40
codegen_flags: <defaults>
</compile_context>

<pallas_src>
import math
from functools import partial

import jax
import jax.numpy as jnp
from jax import lax
from jax.experimental import pallas as pl
from jax.experimental.pallas import tpu as pltpu


_VMEM_LIMIT = 64 * 1024 * 1024


# ----------------------------------------------------------------------------
# Helpers: constant-index BlockSpec (single-buffered) with graceful fallback.
# ----------------------------------------------------------------------------
def _const_spec(shape, index_map, single_buffer):
    if single_buffer:
        return pl.BlockSpec(shape, index_map, pipeline_mode=pl.Buffered(1))
    return pl.BlockSpec(shape, index_map)


def _with_single_buffer_fallback(build_call):
    """Try single-buffered constant blocks; fall back to defaults on failure."""
    try:
        return build_call(True)
    except Exception:
        return build_call(False)


# ----------------------------------------------------------------------------
# Kernel 1: batched input projection  gate_x = x @ W_ih^T + b_ih  (all steps,
# all directions fused into one call; direction axis is "parallel").
# ----------------------------------------------------------------------------
def _proj_kernel(x_ref, w_ref, b_ref, o_ref):
    # Native-dtype operands on the MXU, f32 accumulation/output.
    o_ref[...] = (
        jnp.dot(x_ref[...], w_ref[...], preferred_element_type=jnp.float32)
        + b_ref[...].astype(jnp.float32)
    ).astype(o_ref.dtype)


def input_projection(x_tbi, w_t, b):
    """x_tbi: (T, B, F); w_t: (D, F, 3H); b: (D, 1, 3H) -> (D, T, B, 3H) f32."""
    T, B, F = x_tbi.shape
    D, _, G = w_t.shape
    M = T * B
    x2d = x_tbi.reshape(M, F)
    tm = M if M <= 512 else 512
    grid = (D, pl.cdiv(M, tm))

    def call(single_buffer):
        return pl.pallas_call(
            _proj_kernel,
            out_shape=jax.ShapeDtypeStruct((D, M, G), jnp.float32),
            grid_spec=pltpu.PrefetchScalarGridSpec(
                num_scalar_prefetch=0,
                grid=grid,
                in_specs=[
                    pl.BlockSpec((tm, F), lambda d, m: (m, 0)),
                    _const_spec((None, F, G), lambda d, m: (d, 0, 0), single_buffer),
                    _const_spec((None, 1, G), lambda d, m: (d, 0, 0), single_buffer),
                ],
                out_specs=pl.BlockSpec((None, tm, G), lambda d, m: (d, m, 0)),
            ),
            compiler_params=pltpu.CompilerParams(
                dimension_semantics=("parallel", "parallel"),
                vmem_limit_bytes=_VMEM_LIMIT,
            ),
        )(x2d, w_t, b)

    out = _with_single_buffer_fallback(call)
    return out.reshape(D, T, B, G)


# ----------------------------------------------------------------------------
# Kernel 2: recurrent part.  Consumes precomputed gate_x, carries h in VMEM.
# Grid = (directions "parallel", time-chunks "arbitrary").
# ----------------------------------------------------------------------------
def _gru_recurrent_kernel(gx_ref, w_hh_ref, b_hh_ref, h0_ref,
                          out_ref, hN_ref, h_scratch, *, chunk, bidirectional):
    c = pl.program_id(1)
    H = hN_ref.shape[-1]

    @pl.when(c == 0)
    def _():
        h_scratch[...] = h0_ref[...].astype(jnp.float32)

    w_hh = w_hh_ref[...]                         # (H, 3H) native dtype (MXU)
    b_hh = b_hh_ref[...].astype(jnp.float32)     # (1, 3H)
    h_init = h_scratch[...]                      # (B, H) f32 carry

    if bidirectional:
        is_rev = pl.program_id(0) > 0            # direction 1 walks backwards

    def step(i, h):
        if bidirectional:
            li = jnp.where(is_rev, chunk - 1 - i, i)
        else:
            li = i
        gx = gx_ref[li].astype(jnp.float32)      # (B, 3H) precomputed input gates
        gh = jnp.dot(h.astype(w_hh.dtype), w_hh,
                     preferred_element_type=jnp.float32) + b_hh
        # TODO(synk): for very large H, lane-align the three gate slices
        # (store W_hh per-gate / pad H to a multiple of 128) to avoid
        # tile-boundary relayouts in the slicing below.
        i_r, i_z, i_n = gx[:, :H], gx[:, H:2 * H], gx[:, 2 * H:]
        h_r, h_z, h_n = gh[:, :H], gh[:, H:2 * H], gh[:, 2 * H:]
        r = jax.nn.sigmoid(i_r + h_r)
        z = jax.nn.sigmoid(i_z + h_z)
        n = jnp.tanh(i_n + r * h_n)
        hy = n + z * (h - n)                     # = n + z * (hx - n)
        out_ref[li] = hy.astype(out_ref.dtype)
        return hy

    h_final = lax.fori_loop(0, chunk, step, h_init, unroll=True)
    h_scratch[...] = h_final

    @pl.when(c == pl.num_programs(1) - 1)
    def _():
        hN_ref[...] = h_final.astype(hN_ref.dtype)


def gru_recurrent(gx, w_hh_t, b_hh, h0, out_dtype, bidirectional):
    """gx: (D, T, B, 3H) f32; w_hh_t: (D, H, 3H); b_hh: (D, 1, 3H); h0: (D, B, H).

    Returns (out (D, T, B, H), hN (D, B, H)).  Direction 0 runs forward in
    time, direction 1 (when bidirectional) runs backward; both write outputs
    at their natural time indices.
    """
    D, T, B, G = gx.shape
    H = h0.shape[-1]
    Tc = next(c for c in (32, 16, 8, 4, 2, 1) if T % c == 0)
    C = T // Tc

    def t_idx(d, c):
        # forward direction: chunks in order; reverse direction: back-to-front
        return (1 - d) * c + d * (C - 1 - c)

    kernel = partial(_gru_recurrent_kernel, chunk=Tc, bidirectional=bidirectional)

    def call(single_buffer):
        return pl.pallas_call(
            kernel,
            out_shape=(
                jax.ShapeDtypeStruct((D, T, B, H), out_dtype),
                jax.ShapeDtypeStruct((D, B, H), out_dtype),
            ),
            grid_spec=pltpu.PrefetchScalarGridSpec(
                num_scalar_prefetch=0,
                grid=(D, C),
                in_specs=[
                    pl.BlockSpec((None, Tc, B, G),
                                 lambda d, c: (d, t_idx(d, c), 0, 0)),
                    _const_spec((None, H, G), lambda d, c: (d, 0, 0), single_buffer),
                    _const_spec((None, 1, G), lambda d, c: (d, 0, 0), single_buffer),
                    _const_spec((None, B, H), lambda d, c: (d, 0, 0), single_buffer),
                ],
                out_specs=[
                    pl.BlockSpec((None, Tc, B, H),
                                 lambda d, c: (d, t_idx(d, c), 0, 0)),
                    pl.BlockSpec((None, B, H), lambda d, c: (d, 0, 0)),
                ],
                scratch_shapes=[pltpu.VMEM((B, H), jnp.float32)],
            ),
            compiler_params=pltpu.CompilerParams(
                dimension_semantics=("parallel", "arbitrary"),  # time is serial
                vmem_limit_bytes=_VMEM_LIMIT,
            ),
        )(gx, w_hh_t, b_hh, h0)

    return _with_single_buffer_fallback(call)


# ----------------------------------------------------------------------------
# GRU module (parameter container + glue), mirroring the PyTorch module.
# ----------------------------------------------------------------------------
class PallasGRU:
    def __init__(self, input_size, hidden_size, num_layers=1, bias=True,
                 batch_first=False, bidirectional=False, dtype=jnp.float32,
                 key=None):
        self.input_size = input_size
        self.hidden_size = hidden_size
        self.num_layers = num_layers
        self.bias = bias
        self.batch_first = batch_first
        self.bidirectional = bidirectional
        self.num_directions = 2 if bidirectional else 1
        self.dtype = dtype

        if key is None:
            key = jax.random.PRNGKey(0)

        stdv = 1.0 / math.sqrt(hidden_size) if hidden_size > 0 else 0.0

        def uniform(k, shape):
            return jax.random.uniform(k, shape, dtype=dtype, minval=-stdv, maxval=stdv)

        # params[layer] = dict with direction-stacked arrays:
        #   w_ih_t: (D, in, 3H), w_hh_t: (D, H, 3H), b_ih/b_hh: (D, 1, 3H)
        self.params = []
        D = self.num_directions
        for layer in range(num_layers):
            in_sz = input_size if layer == 0 else hidden_size * D
            w_ih_t, w_hh_t, b_ih, b_hh = [], [], [], []
            for _ in range(D):
                key, k1, k2, k3, k4 = jax.random.split(key, 5)
                w_ih = uniform(k1, (3 * hidden_size, in_sz))   # nn.Linear layout
                w_hh = uniform(k2, (3 * hidden_size, hidden_size))
                if bias:
                    bi = uniform(k3, (3 * hidden_size,))
                    bh = uniform(k4, (3 * hidden_size,))
                else:
                    bi = jnp.zeros((3 * hidden_size,), dtype)
                    bh = jnp.zeros((3 * hidden_size,), dtype)
                w_ih_t.append(jnp.transpose(w_ih))             # (in, 3H)
                w_hh_t.append(jnp.transpose(w_hh))             # (H, 3H)
                b_ih.append(bi.reshape(1, -1))
                b_hh.append(bh.reshape(1, -1))
            self.params.append(dict(
                w_ih_t=jnp.stack(w_ih_t, axis=0),
                w_hh_t=jnp.stack(w_hh_t, axis=0),
                b_ih=jnp.stack(b_ih, axis=0),
                b_hh=jnp.stack(b_hh, axis=0),
            ))

    def __call__(self, x, hx=None):
        batched = x.ndim > 2
        if not batched:
            x_tbi = x[:, None, :]                        # (T, 1, I)
        elif self.batch_first:
            x_tbi = jnp.transpose(x, (1, 0, 2))          # (B, T, I) -> (T, B, I)
        else:
            x_tbi = x                                    # already (T, B, I)

        T, B, _ = x_tbi.shape
        L, D, H = self.num_layers, self.num_directions, self.hidden_size

        if hx is None:
            h0 = jnp.zeros((L, D, B, H), x_tbi.dtype)
        else:
            # mirrors torch: hx.reshape([L, D, (B,) H])
            h0 = hx.reshape(L, D, B, H) if batched else hx.reshape(L, D, 1, H)

        out_dtype = x_tbi.dtype
        layer_in = x_tbi
        hs_list = []
        for i in range(L):
            p = self.params[i]
            # Hoisted input projection: one big matmul (all steps, all dirs).
            gx = input_projection(layer_in, p["w_ih_t"], p["b_ih"])   # (D,T,B,3H)
            out_d, hN = gru_recurrent(gx, p["w_hh_t"], p["b_hh"],
                                      h0[i], out_dtype,
                                      bidirectional=self.bidirectional)
            # (D, T, B, H) -> (T, B, D*H)  (fwd | rev concatenation on last dim)
            layer_in = jnp.transpose(out_d, (1, 2, 0, 3)).reshape(T, B, D * H)
            for d in range(D):                           # fwd, then rev (torch order)
                hs_list.append(hN[d])

        output = layer_in                                # (T, B, H*D)
        output_hs = jnp.stack(hs_list, axis=0)           # (L*D, B, H)

        if not batched:
            output = output[:, 0, :]
            output_hs = output_hs[:, 0, :]
        elif self.batch_first:
            output = jnp.transpose(output, (1, 0, 2))    # (B, T, H*D)
        return output, output_hs


# ----------------------------------------------------------------------------
# Pure-JAX reference (mirrors the PyTorch GRUCell math) for verification.
# ----------------------------------------------------------------------------
def _ref_cell(x, h, w_ih_t, w_hh_t, b_ih, b_hh):
    gx = x @ w_ih_t + b_ih
    gh = h @ w_hh_t + b_hh
    H = h.shape[-1]
    i_r, i_i, i_n = gx[:, :H], gx[:, H:2 * H], gx[:, 2 * H:]
    h_r, h_i, h_n = gh[:, :H], gh[:, H:2 * H], gh[:, 2 * H:]
    r = jax.nn.sigmoid(i_r + h_r)
    z = jax.nn.sigmoid(i_i + h_i)
    n = jnp.tanh(i_n + r * h_n)
    return n + z * (h - n)


def _ref_gru(module: PallasGRU, x):
    # x: (T, B, I) time-major only (reference for the test case below)
    T, B, _ = x.shape
    L, D, H = module.num_layers, module.num_directions, module.hidden_size
    layer_in = x
    hs_list = []
    for i in range(L):
        p = module.params[i]
        h = jnp.zeros((B, H), x.dtype)
        outs = []
        for t in range(T):
            h = _ref_cell(layer_in[t], h, p["w_ih_t"][0], p["w_hh_t"][0],
                          p["b_ih"][0], p["b_hh"][0])
            outs.append(h)
        fwd_out = jnp.stack(outs, 0)
        if module.bidirectional:
            hr = jnp.zeros((B, H), x.dtype)
            routs = []
            for t in reversed(range(T)):
                hr = _ref_cell(layer_in[t], hr, p["w_ih_t"][1], p["w_hh_t"][1],
                               p["b_ih"][1], p["b_hh"][1])
                routs.append(hr)
            rev_out = jnp.stack(routs[::-1], 0)
            layer_in = jnp.concatenate([fwd_out, rev_out], -1)
            hs_list.extend([h, hr])
        else:
            layer_in = fwd_out
            hs_list.append(h)
    return layer_in, jnp.stack(hs_list, 0)


if __name__ == "__main__":
    key = jax.random.PRNGKey(0)
    k_param, k_x = jax.random.split(key)

    T, B, I, H = 8, 2, 16, 32
    num_layers = 2
    bidirectional = True

    gru = PallasGRU(input_size=I, hidden_size=H, num_layers=num_layers,
                    bias=True, batch_first=False, bidirectional=bidirectional,
                    key=k_param)

    x = jax.random.normal(k_x, (T, B, I), dtype=jnp.float32)

    out, h_n = gru(x)
    out = jax.block_until_ready(out)
    h_n = jax.block_until_ready(h_n)

    assert out.shape == (T, B, H * gru.num_directions), out.shape
    assert h_n.shape == (num_layers * gru.num_directions, B, H), h_n.shape

    ref_out, ref_hn = _ref_gru(gru, x)
    assert jnp.allclose(out, ref_out, atol=1e-5, rtol=1e-5), \
        float(jnp.max(jnp.abs(out - ref_out)))
    assert jnp.allclose(h_n, ref_hn, atol=1e-5, rtol=1e-5), \
        float(jnp.max(jnp.abs(h_n - ref_hn)))

    print("KERNEL_OK")
</pallas_src>

<mosaic_0001>
module attributes {stable_mosaic.version = 11 : i64} {
  func.func @_proj_kernel(%arg0: i32, %arg1: i32, %arg2: memref<16x16xf32, #tpu.memory_space<vmem>>, %arg3: memref<1x16x96xf32, #tpu.memory_space<vmem>>, %arg4: memref<1x1x96xf32, #tpu.memory_space<vmem>>, %arg5: memref<1x16x96xf32, #tpu.memory_space<vmem>>) attributes {dimension_semantics = [#tpu.dimension_semantics<parallel>, #tpu.dimension_semantics<parallel>], iteration_bounds = array<i64: 2, 1>, scalar_prefetch = 0 : i64, scratch_operands = 0 : i64, tpu.core_type = #tpu.core_type<tc>, window_params = [{transform_indices = @transform_0, window_bounds = array<i64: 16, 16>}, {pipeline_mode = #tpu.pipeline_mode<synchronous>, transform_indices = @transform_1, window_bounds = array<i64: 1, 16, 96>}, {pipeline_mode = #tpu.pipeline_mode<synchronous>, transform_indices = @transform_2, window_bounds = array<i64: 1, 1, 96>}, {transform_indices = @transform_3, window_bounds = array<i64: 1, 16, 96>}]} {
    %c0 = arith.constant 0 : index
    %c0_0 = arith.constant 0 : index
    %0 = vector.load %arg2[%c0, %c0_0] : memref<16x16xf32, #tpu.memory_space<vmem>>, vector<16x16xf32>
    %c0_1 = arith.constant 0 : index
    %c0_2 = arith.constant 0 : index
    %c0_3 = arith.constant 0 : index
    %1 = vector.load %arg3[%c0_1, %c0_2, %c0_3] : memref<1x16x96xf32, #tpu.memory_space<vmem>>, vector<1x16x96xf32>
    %2 = vector.shape_cast %1 : vector<1x16x96xf32> to vector<16x96xf32>
    %cst = arith.constant dense<0.000000e+00> : vector<16x96xf32>
    %3 = tpu.matmul %0, %2, %cst {dimension_numbers = #tpu.dot_dimension_numbers<[1], [0], [0], [1], [0, 0, 1, 1], [], []>} : vector<16x16xf32>, vector<16x96xf32>, vector<16x96xf32> -> vector<16x96xf32>
    %c0_4 = arith.constant 0 : index
    %c0_5 = arith.constant 0 : index
    %c0_6 = arith.constant 0 : index
    %4 = vector.load %arg4[%c0_4, %c0_5, %c0_6] : memref<1x1x96xf32, #tpu.memory_space<vmem>>, vector<1x1x96xf32>
    %5 = vector.shape_cast %4 : vector<1x1x96xf32> to vector<1x96xf32>
    %6 = vector.broadcast %5 : vector<1x96xf32> to vector<16x96xf32>
    %7 = arith.addf %3, %6 : vector<16x96xf32>
    %c0_7 = arith.constant 0 : index
    %c0_8 = arith.constant 0 : index
    %c0_9 = arith.constant 0 : index
    %8 = vector.load %arg5[%c0_7, %c0_8, %c0_9] : memref<1x16x96xf32, #tpu.memory_space<vmem>>, vector<1x16x96xf32>
    %9 = vector.shape_cast %8 : vector<1x16x96xf32> to vector<16x96xf32>
    %10 = vector.shape_cast %7 : vector<16x96xf32> to vector<1x16x96xf32>
    tpu.vector_store %arg5[%c0_7, %c0_8, %c0_9], %10 {strides = array<i32>} : memref<1x16x96xf32, #tpu.memory_space<vmem>>, vector<1x16x96xf32>,
    return
  }
  func.func @transform_0(%arg0: i32, %arg1: i32) -> (i32, i32) {
    %c0_i32 = arith.constant 0 : i32
    %c0_i32_0 = arith.constant 0 : i32
    return %arg1, %c0_i32 : i32, i32
  }
  func.func @transform_1(%arg0: i32, %arg1: i32) -> (i32, i32, i32) {
    %c0_i32 = arith.constant 0 : i32
    %c0_i32_0 = arith.constant 0 : i32
    %c0_i32_1 = arith.constant 0 : i32
    return %arg0, %c0_i32, %c0_i32_0 : i32, i32, i32
  }
  func.func @transform_2(%arg0: i32, %arg1: i32) -> (i32, i32, i32) {
    %c0_i32 = arith.constant 0 : i32
    %c0_i32_0 = arith.constant 0 : i32
    %c0_i32_1 = arith.constant 0 : i32
    return %arg0, %c0_i32, %c0_i32_0 : i32, i32, i32
  }
  func.func @transform_3(%arg0: i32, %arg1: i32) -> (i32, i32, i32) {
    %c0_i32 = arith.constant 0 : i32
    %c0_i32_0 = arith.constant 0 : i32
    return %arg0, %arg1, %c0_i32 : i32, i32, i32
  }
}

module attributes {stable_mosaic.version = 11 : i64} {
  func.func @_proj_kernel(%arg0: i32, %arg1: i32, %arg2: memref<16x16xf32, #tpu.memory_space<vmem>>, %arg3: memref<1x16x96xf32, #tpu.memory_space<vmem>>, %arg4: memref<1x1x96xf32, #tpu.memory_space<vmem>>, %arg5: memref<1x16x96xf32, #tpu.memory_space<vmem>>) attributes {dimension_semantics = [#tpu.dimension_semantics<parallel>, #tpu.dimension_semantics<parallel>], iteration_bounds = array<i64: 2, 1>, scalar_prefetch = 0 : i64, scratch_operands = 0 : i64, tpu.core_type = #tpu.core_type<tc>, window_params = [{transform_indices = @transform_0, window_bounds = array<i64: 16, 16>}, {transform_indices = @transform_1, window_bounds = array<i64: 1, 16, 96>}, {transform_indices = @transform_2, window_bounds = array<i64: 1, 1, 96>}, {transform_indices = @transform_3, window_bounds = array<i64: 1, 16, 96>}]} {
    %c0 = arith.constant 0 : index
    %c0_0 = arith.constant 0 : index
    %0 = vector.load %arg2[%c0, %c0_0] : memref<16x16xf32, #tpu.memory_space<vmem>>, vector<16x16xf32>
    %c0_1 = arith.constant 0 : index
    %c0_2 = arith.constant 0 : index
    %c0_3 = arith.constant 0 : index
    %1 = vector.load %arg3[%c0_1, %c0_2, %c0_3] : memref<1x16x96xf32, #tpu.memory_space<vmem>>, vector<1x16x96xf32>
    %2 = vector.shape_cast %1 : vector<1x16x96xf32> to vector<16x96xf32>
    %cst = arith.constant dense<0.000000e+00> : vector<16x96xf32>
    %3 = tpu.matmul %0, %2, %cst {dimension_numbers = #tpu.dot_dimension_numbers<[1], [0], [0], [1], [0, 0, 1, 1], [], []>} : vector<16x16xf32>, vector<16x96xf32>, vector<16x96xf32> -> vector<16x96xf32>
    %c0_4 = arith.constant 0 : index
    %c0_5 = arith.constant 0 : index
    %c0_6 = arith.constant 0 : index
    %4 = vector.load %arg4[%c0_4, %c0_5, %c0_6] : memref<1x1x96xf32, #tpu.memory_space<vmem>>, vector<1x1x96xf32>
    %5 = vector.shape_cast %4 : vector<1x1x96xf32> to vector<1x96xf32>
    %6 = vector.broadcast %5 : vector<1x96xf32> to vector<16x96xf32>
    %7 = arith.addf %3, %6 : vector<16x96xf32>
    %c0_7 = arith.constant 0 : index
    %c0_8 = arith.constant 0 : index
    %c0_9 = arith.constant 0 : index
    %8 = vector.load %arg5[%c0_7, %c0_8, %c0_9] : memref<1x16x96xf32, #tpu.memory_space<vmem>>, vector<1x16x96xf32>
    %9 = vector.shape_cast %8 : vector<1x16x96xf32> to vector<16x96xf32>
    %10 = vector.shape_cast %7 : vector<16x96xf32> to vector<1x16x96xf32>
    tpu.vector_store %arg5[%c0_7, %c0_8, %c0_9], %10 {strides = array<i32>} : memref<1x16x96xf32, #tpu.memory_space<vmem>>, vector<1x16x96xf32>,
    return
  }
  func.func @transform_0(%arg0: i32, %arg1: i32) -> (i32, i32) {
    %c0_i32 = arith.constant 0 : i32
    %c0_i32_0 = arith.constant 0 : i32
    return %arg1, %c0_i32 : i32, i32
  }
  func.func @transform_1(%arg0: i32, %arg1: i32) -> (i32, i32, i32) {
    %c0_i32 = arith.constant 0 : i32
    %c0_i32_0 = arith.constant 0 : i32
    %c0_i32_1 = arith.constant 0 : i32
    return %arg0, %c0_i32, %c0_i32_0 : i32, i32, i32
  }
  func.func @transform_2(%arg0: i32, %arg1: i32) -> (i32, i32, i32) {
    %c0_i32 = arith.constant 0 : i32
    %c0_i32_0 = arith.constant 0 : i32
    %c0_i32_1 = arith.constant 0 : i32
    return %arg0, %c0_i32, %c0_i32_0 : i32, i32, i32
  }
  func.func @transform_3(%arg0: i32, %arg1: i32) -> (i32, i32, i32) {
    %c0_i32 = arith.constant 0 : i32
    %c0_i32_0 = arith.constant 0 : i32
    return %arg0, %arg1, %c0_i32 : i32, i32, i32
  }
}

</mosaic_0001>

<bundles_post_ra>
// kernel: tpu_custom_call.1
= control target key start
LH: loop header
LB: loop body
LE: loop exit
PB: predicated region body
PF: predicated region fallthrough
CT: control target
= control target key end

     0   :  { %s989_s0 = inlined_call_operand.hbm [shape: f32[16,16], index: 0, kind: input, shape index: {}]   ;;  %s990_s1 = inlined_call_operand.hbm [shape: f32[2,16,96], index: 1, kind: input, shape index: {}]   ;;  %s991_s2 = inlined_call_operand.hbm [shape: f32[2,1,96], index: 2, kind: input, shape index: {}]   ;;  %s992_s3 = inlined_call_operand.hbm [shape: f32[2,16,96], index: 3, kind: output, shape index: {}]  }
   0x1   :  { %1004 = sst [smem:[#allocation12_spill]] %s990_s1 }
   0x2   :  { %8 = vsyncpa [#allocation3], 0 }
   0x3   :  { %9 = vsyncpa [#allocation6], 0 }
   0x4   :  { %10 = vsyncpa [#allocation4], 0 }
   0x5   :  { %12 = vsyncpa [#allocation4 + $0x1], 0  ;;  %s761_s12 = smov 0   ;;  %s763_s13 = smov 0  }
   0x6   :  { %s765_s14 = smov 0   ;;  %s767_s15 = smov 0  }
   0x7   :  { %s769_s16 = smov 0   ;;  %s771_s17 = smov 0  }
   0x8 LB: > { %s440_s18 = sadd.s32 4294967295, %s731_s17   ;;  %s441_s19 = sadd.s32 4294967294, %s731_s17   ;;  %s731_s17 = sphi %s771_s17, %s18_s17   ;;  %s727_s16 = sphi %s769_s16, %s1028_s16   ;;  %s723_s15 = sphi %s767_s15, %s1027_s15   ;;  %s719_s14 = sphi %s765_s14, %s1026_s14   ;;  %s715_s13 = sphi %s763_s13, %s1025_s13   ;;  %s711_s12 = sphi %s761_s12, %s1024_s12  }
   0x9   : > { %s30_s20 = sadd.s32 1, %s727_s16  ;;  %s63_s21 = sadd.s32 1, %s719_s14 }
   0xa   : > { %p32_p0 = scmp.ge.s32.totalorder %s30_s20, 2  ;;  %p76_p1 = scmp.ne.s32.totalorder %s715_s13, %s711_s12 }
   0xb   : > { %p797_p2 = scmp.eq.s32.totalorder %s440_s18, 0  ;;  %p127_p3 = scmp.ne.s32.totalorder %s719_s14, %s715_s13 }
   0xc   : > { %s1030_s20 = smov (%p32_p0, %s30_s20), 0  ;;  %p128_p5 = scmp.eq.s32.totalorder %s440_s18, 1 }
   0xd   : > { %s1005_s22 = scalar_select %p797_p2, 1, 0 }
   0xe   : > { %p807_p4 = por %p797_p2, %p76_p1  ;;  %s60_s24 = ssub.s32 %s727_s16, %s1030_s20 }
   0xf   : > { %p134_p6 = scmp.eq.s32.totalorder %s441_s19, 1  ;;  %p61_p7 = scmp.eq.s32.totalorder %s60_s24, 0 }
  0x10   : > { %s1006_s23 = scalar_select %p807_p4, 1, 0 }
  0x11   : > { %p813_p8 = por %p128_p5, %p127_p3  ;;  %p817_p9 = por %p134_p6, %p76_p1 }
  0x12   : > { %p442_p10 = scmp.ge.s32.totalorder %s731_s17, 1  ;;  %p141_p11 = scmp.lt.s32.totalorder %s731_s17, 3 }
  0x13   : > { %s1007_s25 = scalar_select %p813_p8, 1, 0 }
  0x14   : > { %s1008_s26 = scalar_select %p817_p9, 1, 0 }
  0x15   : > { %s823_s27 = scalar_select %p61_p7, %s719_s14, %s63_s21  }
  0x16   : > { %p826_p12 = pnand %p442_p10, %p141_p11  ;;  %s1000_s29 = sshll.u32 %s723_s15, 8 }
  0x17   : > { %s1010_s1 = sld [smem:[#allocation12_spill]]  ;;  %s733_s6 = smov [#allocation5]  }
  0x18   : > { %s1009_s28 = scalar_select %p826_p12, 1, 0 }
  0x19   : > { %p485_p13 = pneg %p826_p12  ;;  %s172_s7 = sshll.u32 %s733_s6, 4  ;;  %s840_s7 = int_to_ptr.vmem [resolvable:$true] %s172_s7 }
  0x1a   : > { %s734_s9 = smov [#allocation2]  }
  0x1b   : > { %p844_p0 = pnand %p485_p13, %p807_p4  ;;  %s156_s10 = sshll.u32 %s734_s9, 4  ;;  %s848_s10 = int_to_ptr.vmem [resolvable:$true] %s156_s10 }
  0x1c   : > { %p852_p1 = pnand %p485_p13, %p797_p2 }
  0x1d   : > { %s836_s5 = scalar_lea.hbm %s1010_s1, %s1000_s29  ;;  %p1001_p5 = pneg %p844_p0 }
  0x1e   : > { %s1011_s8 = scalar_select %p844_p0, 1, 0 }
  0x1f   : > { %s1012_s11 = scalar_select %p852_p1, 1, 0 }
  0x20   : > { %s557_s19 = scalar_lea.hbm %s836_s5, 256  ;;  %s562_s30 = scalar_lea.hbm %s1010_s1, 512 }
  0x21   : > { %p558_p3 = scmp.ne.s32.totalorder %s836_s5, %s557_s19  ;;  %p563_p10 = scmp.lt.u32.totalorder %s836_s5, %s1010_s1 }
  0x22   : > { %p564_p11 = scmp.lt.u32.totalorder %s562_s30, %s557_s19  ;;  %p566_p9 = scmp.lt.u32.totalorder %s557_s19, %s836_s5 }
  0x23   : > { %p560_p6 = pnand %p1001_p5, %p558_p3 }
  0x24   : > { %p565_p13 = por %p564_p11, %p563_p10 }
  0x25   : > { %p561_p7 = pneg %p560_p6 }
  0x26   : > { %p567_p8 = por %p566_p9, %p565_p13 }
  0x28   : > { %p568_p4 = pnand %p567_p8, %p561_p7 }
  0x2a   : > { %571 = shalt.err (!%p568_p4)
}
  0x2b   : > { %s572_s9 = scalar_lea.vmem %s840_s7, 256  ;;  %p580_p12 = scmp.lt.s32.totalorder %s840_s7, %s840_s7 }
  0x2c   : > { %p573_p3 = scmp.ne.s32.totalorder %s840_s7, %s572_s9  ;;  %p581_p1 = scmp.lt.s32.totalorder %s572_s9, %s572_s9 }
  0x2e   : > { %p575_p6 = pnand %p573_p3, %p1001_p5  ;;  %p582_p10 = por %p581_p1, %p580_p12 }
  0x30   : > { %p576_p2 = pneg %p575_p6 }
  0x32   : > { %p583_p11 = pnand %p582_p10, %p576_p2 }
  0x34   : > { %586 = shalt.err (!%p583_p11)
}
  0x35   : > { %s735_s19 = smov 128   ;;  %s736_s21 = smov 8  }
  0x36   : > { %491 = dma.hbm_to_vmem [thread:$0]  (!%p844_p0), %s836_s5, 256, %s840_s7, [#allocation6], %s735_s19, %s735_s19, %s736_s21  }
  0x37   : > { %s587_s4 = scalar_lea.hbm %s989_s0, 256  ;;  %p1013_p8 = scmp.ne.s32.totalorder %s1012_s11, 0 }
  0x38   : > { %p588_p4 = scmp.ne.s32.totalorder %s989_s0, %s587_s4  ;;  %p594_p1 = scmp.lt.u32.totalorder %s587_s4, %s989_s0 }
  0x39   : > { %p589_p9 = pneg %p1013_p8 }
  0x3b   : > { %p590_p2 = pnand %p589_p9, %p588_p4 }
  0x3d   : > { %p591_p12 = pneg %p590_p2 }
  0x3f   : > { %p596_p7 = pnand %p594_p1, %p591_p12 }
  0x41   : > { %599 = shalt.err (!%p596_p7)
}
  0x42   : > { %s600_s5 = scalar_lea.vmem %s848_s10, 256  ;;  %p608_p10 = scmp.lt.s32.totalorder %s848_s10, %s848_s10 }
  0x43   : > { %p601_p13 = scmp.ne.s32.totalorder %s848_s10, %s600_s5  ;;  %p609_p11 = scmp.lt.s32.totalorder %s600_s5, %s600_s5 }
  0x45   : > { %p603_p3 = pnand %p601_p13, %p589_p9  ;;  %p610_p5 = por %p609_p11, %p608_p10 }
  0x47   : > { %p604_p6 = pneg %p603_p3 }
  0x49   : > { %p611_p0 = pnand %p610_p5, %p604_p6 }
  0x4b   : > { %614 = shalt.err (!%p611_p0)
}
  0x4c   : > { %488 = dma.hbm_to_vmem [thread:$0]  (!%p1013_p8), %s989_s0, 256, %s848_s10, [#allocation3], %s735_s19, %s735_s19, %s736_s21  }
  0x4d   : > { %s1014_s18 = sshll.u32 %s723_s15, 4  ;;  %s737_s6 = smov [#allocation7]  }
  0x4e   : > { %s186_s4 = scalar_lea.hbm %s991_s2, %s1014_s18  ;;  %s188_s9 = sshll.u32 %s737_s6, 4  ;;  %s189_s9 = int_to_ptr.vmem [resolvable:$true] %s188_s9 }
  0x4f   : > { %s615_s5 = scalar_lea.hbm %s186_s4, 16  ;;  %p1015_p0 = scmp.ne.s32.totalorder %s1011_s8, 0 }
  0x50   : > { %p616_p5 = scmp.ne.s32.totalorder %s186_s4, %s615_s5  ;;  %s620_s29 = scalar_lea.hbm %s991_s2, 32 }
  0x51   : > { %p1016_p4 = pneg %p1015_p0  ;;  %p621_p8 = scmp.lt.u32.totalorder %s186_s4, %s991_s2 }
  0x52   : > { %p622_p12 = scmp.lt.u32.totalorder %s620_s29, %s615_s5  ;;  %p624_p7 = scmp.lt.u32.totalorder %s615_s5, %s186_s4 }
  0x53   : > { %p618_p9 = pnand %p616_p5, %p1016_p4 }
  0x54   : > { %p623_p1 = por %p622_p12, %p621_p8 }
  0x55   : > { %p619_p2 = pneg %p618_p9 }
  0x56   : > { %p625_p13 = por %p624_p7, %p623_p1 }
  0x58   : > { %p626_p3 = pnand %p625_p13, %p619_p2 }
  0x5a   : > { %629 = shalt.err (!%p626_p3)
}
  0x5b   : > { %s630_s19 = scalar_lea.vmem %s189_s9, 16  ;;  %p1017_p10 = pmov %p1016_p4 }
  0x5c   : > { %p631_p6 = scmp.ne.s32.totalorder %s189_s9, %s630_s19  ;;  %s637_s21 = scalar_lea.vmem %s189_s9, 32 }
  0x5d   : > { %p638_p4 = scmp.lt.s32.totalorder %s189_s9, %s189_s9  ;;  %p639_p9 = scmp.lt.s32.totalorder %s637_s21, %s630_s19 }
  0x5e   : > { %p633_p11 = pnand %p631_p6, %p1017_p10 }
  0x5f   : > { %p640_p8 = por %p639_p9, %p638_p4 }
  0x60   : > { %p634_p5 = pneg %p633_p11 }
  0x62   : > { %p641_p12 = pnand %p640_p8, %p634_p5 }
  0x64   : > { %644 = shalt.err (!%p641_p12)
}
  0x65   : > { %494 = dma.hbm_to_vmem [thread:$0]  (!%p1015_p0), %s186_s4, 16, %s189_s9, [#allocation6]  }
  0x66   : > { %p1018_p1 = scmp.ne.s32.totalorder %s1009_s28, 0 }
  0x67   : > { %p1019_p2 = scmp.ne.s32.totalorder (!%p1018_p1), %s1005_s22, 0 }
  0x68   : > { %201 = sbr.rel (%p1018_p1) target bundleno = 352 (0x160), region = 32 }
  0x6f   : > { %698 = dma.done.wait (%p1019_p2), [#allocation3], 256  }
  0x70   : > { %700 = vsyncadd (%p1019_p2), [#allocation3], 4294967040  ;;  %p1020_p7 = scmp.ne.s32.totalorder %s1006_s23, 0 }
  0x72   : > { %702 = dma.done.wait (%p1020_p7), [#allocation6], 272  }
  0x73   : > { %704 = vsyncadd (%p1020_p7), [#allocation6], 4294967024  ;;  %vm241_vm0 = vcmask 130048   ;;  %v232_v0 = vld [vmem:[#allocation5] sm:$0xff]  ;;  %v233_v1 = vld [vmem:[#allocation5 + $0x8] sm:$0xff]  ;;  %s225_s1 = sand.u32 1, %s715_s13  }
  0x74   : > { %v230_v2 = vld [vmem:[#allocation2] sm:$0xff]  ;;  %v471_v3 = vpack.c.bf16 %v233_v1, %v232_v0  ;;  %v231_v4 = vld [vmem:[#allocation2 + $0x8] sm:$0xff]  ;;  %s449_s22 = sshll.u32 %s225_s1, 4  ;;  %vm323_vm1 = vcmask 785408   ;;  %s1021_s23 = sshll.u32 %s723_s15, 8 }
  0x75   : > { %468 = vmatprep.mubr.msk.f32.mxu0 %vm241_vm0, %v230_v2  ;;  %v450_v5 = vld [vmem:[#allocation7] ss:$0 sm:$0xff]  ;;  %s227_s28 = scalar_lea.vmem [#allocation8], %s449_s22  ;;  %s941_s30 = scalar_lea.hbm %s992_s3, %s1021_s23 }
  0x76   : > { %472 = vmatprep.subr.bf16.mxu0 %v471_v3  ;;  %s342_s8 = sshll.u32 %s227_s28, 4  ;;  %s943_s4 = scalar_lea.sflag [#allocation4], %s225_s1  ;;  %s934_s8 = int_to_ptr.vmem [resolvable:$true] %s342_s8 }
  0x77   : > { %474 = vmatpush3.bf16.msra.mxu0 %v471_v3  ;;  %s645_s6 = scalar_lea.vmem %s934_s8, 256  ;;  %p1022_p13 = scmp.ne.s32.totalorder %s1007_s25, 0 }
  0x78   : > { %p646_p0 = scmp.ne.s32.totalorder %s934_s8, %s645_s6  ;;  %s738_s9 = smov [#allocation8]  }
  0x79   : > { %s649_s5 = sshll.u32 %s738_s9, 4  ;;  %s650_s5 = int_to_ptr.vmem [resolvable:$false] %s649_s5 }
  0x7a   : > { %469 = vmatmul.mubr.msk.f32.vlgmr.msra.gmra.mrb[0].mxu0 %vm241_vm0, %v231_v4  ;;  %p647_p3 = pnand %p646_p0, %p1022_p13  ;;  %s651_s11 = scalar_lea.vmem %s650_s5, 512 }
  0x7b   : > { %p652_p10 = scmp.lt.s32.totalorder %s934_s8, %s650_s5  ;;  %p653_p11 = scmp.lt.s32.totalorder %s651_s11, %s645_s6 }
  0x7c   : > { %p648_p6 = pneg %p647_p3 }
  0x7d   : > { %p654_p5 = por %p653_p11, %p652_p10 }
  0x7f   : > { %p655_p4 = pnand %p654_p5, %p648_p6 }
 0x14d   : > { %v470_v6 = vpop.f32.mrb[0].mxu0 }
 0x14e   : > { %v320_v7 = vadd.f32 %v470_v6, %v450_v5  ;;  %v314_v8 = vpop.f32.mrb[1].mxu0 }
 0x14f   : > { %v315_v9 = vadd.f32 %v450_v5, %v314_v8 }
 0x150   : > { %325 = vst.msk [vmem:[%s227_s28 + $0x8] sm:$0xff] %vm323_vm1, %v320_v7 }
 0x151   : > { %324 = vst.msk [vmem:[%s227_s28] sm:$0xff] %vm323_vm1, %v315_v9 }
 0x152   : > { %658 = shalt.err (!%p655_p4)
}
 0x153   : > { %s659_s15 = scalar_lea.hbm %s941_s30, 256  ;;  %s663_s10 = scalar_lea.hbm %s992_s3, 512 }
 0x154   : > { %p660_p9 = scmp.ne.s32.totalorder %s941_s30, %s659_s15  ;;  %p664_p1 = scmp.lt.u32.totalorder %s941_s30, %s992_s3 }
 0x155   : > { %p665_p2 = scmp.lt.u32.totalorder %s663_s10, %s659_s15  ;;  %p667_p0 = scmp.lt.u32.totalorder %s659_s15, %s941_s30 }
 0x156   : > { %p661_p8 = pnand %p660_p9, %p1022_p13 }
 0x157   : > { %p666_p7 = por %p665_p2, %p664_p1 }
 0x158   : > { %p662_p12 = pneg %p661_p8 }
 0x159   : > { %p668_p3 = por %p667_p0, %p666_p7 }
 0x15b   : > { %p669_p6 = pnand %p668_p3, %p662_p12 }
 0x15d   : > { %672 = shalt.err (!%p669_p6)
}
 0x15e   : > { %s739_s1 = smov 128   ;;  %s740_s22 = smov 8  }
 0x15f   : > { %483 = dma.vmem_to_hbm [thread:$0]  (%p1022_p13), %s934_s8, 256, %s941_s30, %s943_s4, %s739_s1, %s739_s1, %s740_s22  }
 0x160 PF: > { %p501_p10 = scmp.ge.s32.totalorder %s731_s17, 2  ;;  %s357_s28 = sand.u32 1, %s711_s12  }
 0x161   : > { %p1023_p11 = scmp.ne.s32.totalorder %s1008_s26, 0  ;;  %s358_s23 = scalar_lea.sflag [#allocation4], %s357_s28 }
 0x163   : > { %p496_p5 = pnand %p501_p10, %p1023_p11 }
 0x165   : > { %706 = dma.done.wait (!%p496_p5), %s358_s23, 256  }
 0x166   : > { %708 = vsyncadd (!%p496_p5), %s358_s23, 4294967040  ;;  %s18_s17 = sadd.s32 1, %s731_s17   ;;  %s1024_s12 = smov %s715_s13 }
 0x167   : > { %p15_p4 = scmp.ge.s32.totalorder %s18_s17, 4   ;;  %s1025_s13 = smov %s719_s14 }
 0x168   : > { %s1026_s14 = smov %s823_s27  ;;  %s1027_s15 = smov %s727_s16 }
 0x169   : > { %s1028_s16 = smov %s1030_s20  ;;  %17 = sbr.rel (!%p15_p4) target bundleno = 8 (0x8), region = 80 }
 0x170   :  { %363 = vsyncpa [#allocation3], 1 }
 0x171   :  { %365 = vsyncpa [#allocation3 + $0x1], 1 }
 0x172   :  { %366 = vsyncpa [#allocation6], 1 }
 0x173   :  { %367 = vsyncpa [#allocation4], 1 }
 0x174   :  { %369 = vsyncpa [#allocation4 + $0x1], 1 }

// kernel: tpu_custom_call.1
= control target key start
LH: loop header
LB: loop body
LE: loop exit
PB: predicated region body
PF: predicated region fallthrough
CT: control target
= control target key end

     0   :  { %s1074_s0 = inlined_call_operand.hbm [shape: f32[16,16], index: 0, kind: input, shape index: {}]   ;;  %s1075_s1 = inlined_call_operand.hbm [shape: f32[2,16,96], index: 1, kind: input, shape index: {}]   ;;  %s1076_s2 = inlined_call_operand.hbm [shape: f32[2,1,96], index: 2, kind: input, shape index: {}]   ;;  %s1077_s3 = inlined_call_operand.hbm [shape: f32[2,16,96], index: 3, kind: output, shape index: {}]  }
   0x1   :  { %1085 = sst [smem:[#allocation12_spill]] %s1075_s1 }
   0x2   :  { %8 = vsyncpa [#allocation3], 0 }
   0x3   :  { %9 = vsyncpa [#allocation6], 0 }
   0x4   :  { %11 = vsyncpa [#allocation6 + $0x1], 0 }
   0x5   :  { %12 = vsyncpa [#allocation4], 0 }
   0x6   :  { %14 = vsyncpa [#allocation4 + $0x1], 0  ;;  %s810_s12 = smov 0   ;;  %s812_s13 = smov 0  }
   0x7   :  { %s814_s14 = smov 0   ;;  %s816_s15 = smov 0  }
   0x8   :  { %s818_s16 = smov 0   ;;  %s820_s17 = smov 0  }
   0x9 LB: > { %s32_s18 = sadd.s32 1, %s776_s16  ;;  %s65_s19 = sadd.s32 1, %s768_s14  ;;  %s780_s17 = sphi %s820_s17, %s20_s17   ;;  %s776_s16 = sphi %s818_s16, %s1108_s16   ;;  %s772_s15 = sphi %s816_s15, %s1107_s15   ;;  %s768_s14 = sphi %s814_s14, %s1106_s14   ;;  %s764_s13 = sphi %s812_s13, %s1105_s13   ;;  %s760_s12 = sphi %s810_s12, %s1104_s12  }
   0xa   : > { %p34_p0 = scmp.ge.s32.totalorder %s32_s18, 2  ;;  %p72_p1 = scmp.ne.s32.totalorder %s768_s14, %s764_s13 }
   0xb   : > { %p73_p2 = scmp.eq.s32.totalorder %s780_s17, 0  ;;  %p550_p6 = scmp.lt.s32.totalorder %s780_s17, 2 }
   0xc   : > { %s1110_s18 = smov (%p34_p0, %s32_s18), 0  ;;  %s172_s22 = sand.u32 1, %s780_s17  }
   0xd   : > { %p850_p3 = por %p73_p2, %p72_p1  ;;  %s62_s21 = ssub.s32 %s776_s16, %s1110_s18 }
   0xe   : > { %p63_p5 = scmp.eq.s32.totalorder %s62_s21, 0  ;;  %s174_s23 = sand.u32 1, %s768_s14  }
   0xf   : > { %s491_s25 = sshll.u32 %s174_s23, 4  ;;  %s507_s26 = sshll.u32 %s776_s16, 8 }
  0x10   : > { %s861_s24 = scalar_select %p63_p5, %s768_s14, %s65_s19  }
  0x11   : > { %s1087_s1 = sld [smem:[#allocation12_spill]]  ;;  %s176_s30 = scalar_lea.vmem [#allocation5], %s491_s25 }
  0x12   : > { %s183_s4 = sshll.u32 %s176_s30, 4  ;;  %p875_p7 = pnand %p550_p6, %p850_p3  ;;  %s871_s4 = int_to_ptr.vmem [resolvable:$true] %s183_s4 }
  0x13   : > { %s879_s6 = scalar_lea.sflag [#allocation6], %s172_s22 }
  0x14   : > { %p608_p9 = pneg %p875_p7 }
  0x17   : > { %s869_s29 = scalar_lea.hbm %s1087_s1, %s507_s26  ;;  %s611_s10 = scalar_lea.hbm %s1087_s1, 512 }
  0x18   : > { %s606_s7 = scalar_lea.hbm %s869_s29, 256  ;;  %p612_p12 = scmp.lt.u32.totalorder %s869_s29, %s1087_s1 }
  0x19   : > { %p607_p8 = scmp.ne.s32.totalorder %s869_s29, %s606_s7  ;;  %p613_p13 = scmp.lt.u32.totalorder %s611_s10, %s606_s7 }
  0x1a   : > { %p615_p2 = scmp.lt.u32.totalorder %s606_s7, %s869_s29 }
  0x1b   : > { %p609_p10 = pnand %p608_p9, %p607_p8  ;;  %p614_p0 = por %p613_p13, %p612_p12 }
  0x1d   : > { %p610_p11 = pneg %p609_p10  ;;  %p616_p3 = por %p615_p2, %p614_p0 }
  0x1f   : > { %p617_p5 = pnand %p616_p3, %p610_p11 }
  0x21   : > { %620 = shalt.err (!%p617_p5)
}
  0x22   : > { %s621_s20 = scalar_lea.vmem %s871_s4, 256  ;;  %s782_s21 = smov [#allocation5]  }
  0x23   : > { %p622_p6 = scmp.ne.s32.totalorder %s871_s4, %s621_s20  ;;  %s626_s22 = sshll.u32 %s782_s21, 4  ;;  %s627_s22 = int_to_ptr.vmem [resolvable:$false] %s626_s22 }
  0x24   : > { %s628_s25 = scalar_lea.vmem %s627_s22, 512  ;;  %p629_p4 = scmp.lt.s32.totalorder %s871_s4, %s627_s22 }
  0x25   : > { %p624_p8 = pnand %p622_p6, %p608_p9  ;;  %p630_p12 = scmp.lt.s32.totalorder %s628_s25, %s621_s20 }
  0x27   : > { %p625_p10 = pneg %p624_p8  ;;  %p631_p13 = por %p630_p12, %p629_p4 }
  0x29   : > { %p632_p0 = pnand %p631_p13, %p625_p10 }
  0x2b   : > { %635 = shalt.err (!%p632_p0)
}
  0x2c   : > { %s1078_s26 = smov 128   ;;  %s1079_s27 = smov 8  }
  0x2d   : > { %541 = dma.hbm_to_vmem [thread:$0]  (!%p875_p7), %s869_s29, 256, %s871_s4, %s879_s6, %s1078_s26, %s1078_s26, %s1079_s27  }
  0x2e   : > { %s911_s28 = sadd.s32 4294967295, %s780_s17   ;;  %s487_s30 = sadd.s32 4294967294, %s780_s17  }
  0x2f   : > { %p78_p4 = scmp.ne.s32.totalorder %s764_s13, %s760_s12  ;;  %p1080_p11 = scmp.eq.s32.totalorder %s911_s28, 0 }
  0x30   : > { %p130_p2 = scmp.eq.s32.totalorder %s911_s28, 1  ;;  %p136_p3 = scmp.eq.s32.totalorder %s487_s30, 1 }
  0x31   : > { %p488_p5 = scmp.ge.s32.totalorder %s780_s17, 1  ;;  %p921_p6 = por %p1080_p11, %p78_p4 }
  0x32   : > { %p928_p8 = por %p130_p2, %p72_p1  ;;  %p932_p10 = por %p136_p3, %p78_p4 }
  0x33   : > { %s1089_s7 = scalar_select %p921_p6, 1, 0 }
  0x34   : > { %s1090_s29 = scalar_select %p928_p8, 1, 0 }
  0x35   : > { %s1091_s4 = scalar_select %p932_p10, 1, 0 }
  0x36   : > { %p143_p12 = scmp.lt.s32.totalorder %s780_s17, 3  ;;  %s785_s9 = smov [#allocation2]  }
  0x37   : > { %s158_s10 = sshll.u32 %s785_s9, 4  ;;  %s494_s11 = sshll.u32 %s776_s16, 4  ;;  %s941_s10 = int_to_ptr.vmem [resolvable:$true] %s158_s10 }
  0x38   : > { %p937_p13 = pnand %p488_p5, %p143_p12  ;;  %s949_s21 = scalar_lea.hbm %s1076_s2, %s494_s11 }
  0x39   : > { %s196_s22 = scalar_lea.vmem [#allocation7], %s174_s23  ;;  %s636_s9 = scalar_lea.hbm %s949_s21, 16 }
  0x3a   : > { %s1092_s8 = scalar_select %p937_p13, 1, 0 }
  0x3b   : > { %p534_p1 = pneg %p937_p13  ;;  %s203_s25 = sshll.u32 %s196_s22, 4  ;;  %s204_s25 = int_to_ptr.vmem [resolvable:$true] %s203_s25 }
  0x3c   : > { %p637_p4 = scmp.ne.s32.totalorder %s949_s21, %s636_s9  ;;  %s641_s20 = scalar_lea.hbm %s1076_s2, 32 }
  0x3d   : > { %p955_p0 = pnand %p534_p1, %p1080_p11  ;;  %p642_p5 = scmp.lt.u32.totalorder %s949_s21, %s1076_s2 }
  0x3e   : > { %p639_p2 = pnand %p637_p4, %p608_p9  ;;  %p643_p12 = scmp.lt.u32.totalorder %s641_s20, %s636_s9 }
  0x3f   : > { %s1093_s30 = scalar_select %p955_p0, 1, 0 }
  0x40   : > { %p640_p3 = pneg %p639_p2  ;;  %p644_p1 = por %p643_p12, %p642_p5 }
  0x41   : > { %p645_p11 = scmp.lt.u32.totalorder %s636_s9, %s949_s21 }
  0x43   : > { %p646_p10 = por %p645_p11, %p644_p1 }
  0x45   : > { %p647_p8 = pnand %p646_p10, %p640_p3 }
  0x47   : > { %650 = shalt.err (!%p647_p8)
}
  0x48   : > { %s651_s23 = scalar_lea.vmem %s204_s25, 16  ;;  %s786_s22 = smov [#allocation7]  }
  0x49   : > { %p652_p6 = scmp.ne.s32.totalorder %s204_s25, %s651_s23  ;;  %s656_s11 = sshll.u32 %s786_s22, 4  ;;  %s657_s11 = int_to_ptr.vmem [resolvable:$false] %s656_s11 }
  0x4a   : > { %s658_s19 = scalar_lea.vmem %s657_s11, 32  ;;  %p659_p13 = scmp.lt.s32.totalorder %s204_s25, %s657_s11 }
  0x4b   : > { %p654_p4 = pnand %p652_p6, %p608_p9  ;;  %p660_p0 = scmp.lt.s32.totalorder %s658_s19, %s651_s23 }
  0x4d   : > { %p655_p2 = pneg %p654_p4  ;;  %p661_p5 = por %p660_p0, %p659_p13 }
  0x4f   : > { %p662_p12 = pnand %p661_p5, %p655_p2 }
  0x51   : > { %665 = shalt.err (!%p662_p12)
}
  0x52   : > { %544 = dma.hbm_to_vmem [thread:$0]  (!%p875_p7), %s949_s21, 16, %s204_s25, %s879_s6  }
  0x53   : > { %s666_s9 = scalar_lea.hbm %s1074_s0, 256  ;;  %p1094_p11 = scmp.ne.s32.totalorder %s1093_s30, 0 }
  0x54   : > { %p667_p9 = scmp.ne.s32.totalorder %s1074_s0, %s666_s9  ;;  %p673_p13 = scmp.lt.u32.totalorder %s666_s9, %s1074_s0 }
  0x55   : > { %p668_p6 = pneg %p1094_p11 }
  0x57   : > { %p669_p8 = pnand %p668_p6, %p667_p9 }
  0x59   : > { %p670_p10 = pneg %p669_p8 }
  0x5b   : > { %p675_p0 = pnand %p673_p13, %p670_p10 }
  0x5d   : > { %678 = shalt.err (!%p675_p0)
}
  0x5e   : > { %s679_s5 = scalar_lea.vmem %s941_s10, 256  ;;  %p687_p4 = scmp.lt.s32.totalorder %s941_s10, %s941_s10 }
  0x5f   : > { %p680_p7 = scmp.ne.s32.totalorder %s941_s10, %s679_s5  ;;  %p688_p2 = scmp.lt.s32.totalorder %s679_s5, %s679_s5 }
  0x61   : > { %p682_p3 = pnand %p680_p7, %p668_p6  ;;  %p689_p5 = por %p688_p2, %p687_p4 }
  0x63   : > { %p683_p1 = pneg %p682_p3 }
  0x65   : > { %p690_p12 = pnand %p689_p5, %p683_p1 }
  0x67   : > { %693 = shalt.err (!%p690_p12)
}
  0x68   : > { %s1095_s1 = smov 8   ;;  %s1096_s6 = smov 128  }
  0x69   : > { %537 = dma.hbm_to_vmem [thread:$0]  (!%p1094_p11), %s1074_s0, 256, %s941_s10, [#allocation3], %s1096_s6, %s1096_s6, %s1095_s1  }
  0x6a   : > { %p1097_p9 = scmp.ne.s32.totalorder %s1092_s8, 0 }
  0x6b   : > { %p1098_p6 = scmp.eq.s32.totalorder (!%p1097_p9), %s911_s28, 0 }
  0x6c   : > { %212 = sbr.rel (%p1097_p9) target bundleno = 358 (0x166), region = 32 }
  0x73   : > { %747 = dma.done.wait (%p1098_p6), [#allocation3], 256   ;;  %p1099_p8 = pmov %p1098_p6 }
  0x74   : > { %s218_s30 = sand.u32 1, %s911_s28   ;;  %s1011_s11 = sand.u32 1, %s764_s13  }
  0x75   : > { %749 = vsyncadd (%p1099_p8), [#allocation3], 4294967040  ;;  %s497_s19 = sshll.u32 %s1011_s11, 4  ;;  %s219_s26 = scalar_lea.sflag [#allocation6], %s218_s30 }
  0x76   : > { %s222_s27 = scalar_lea.vmem [#allocation5], %s497_s19  ;;  %p1100_p11 = scmp.ne.s32.totalorder %s1089_s7, 0 }
  0x78   : > { %751 = dma.done.wait (%p1100_p11), %s219_s26, 272  }
  0x79   : > { %753 = vsyncadd (%p1100_p11), %s219_s26, 4294967024  ;;  %vm270_vm0 = vcmask 130048   ;;  %v261_v0 = vld [vmem:[%s222_s27] sm:$0xff]  ;;  %v262_v1 = vld [vmem:[%s222_s27 + $0x8] sm:$0xff]  ;;  %s256_s28 = scalar_lea.vmem [#allocation8], %s497_s19  ;;  %s230_s10 = scalar_lea.vmem [#allocation7], %s1011_s11 }
  0x7a   : > { %v259_v2 = vld [vmem:[#allocation2] sm:$0xff]  ;;  %v520_v3 = vpack.c.bf16 %v262_v1, %v261_v0  ;;  %v260_v4 = vld [vmem:[#allocation2 + $0x8] sm:$0xff]  ;;  %s371_s8 = sshll.u32 %s256_s28, 4  ;;  %s508_s7 = sshll.u32 %s772_s15, 8  ;;  %vm352_vm1 = vcmask 785408   ;;  %s1020_s8 = int_to_ptr.vmem [resolvable:$true] %s371_s8 }
  0x7b   : > { %517 = vmatprep.mubr.msk.f32.mxu0 %vm270_vm0, %v259_v2  ;;  %v499_v5 = vld [vmem:[%s230_s10] ss:$0 sm:$0xff]  ;;  %s1025_s23 = scalar_lea.hbm %s1077_s3, %s508_s7  ;;  %s356_s22 = scalar_lea.sflag [#allocation4], %s1011_s11 }
  0x7c   : > { %521 = vmatprep.subr.bf16.mxu0 %v520_v3  ;;  %s694_s5 = scalar_lea.vmem %s1020_s8, 256  ;;  %p1101_p13 = scmp.ne.s32.totalorder %s1090_s29, 0 }
  0x7d   : > { %523 = vmatpush3.bf16.msra.mxu0 %v520_v3  ;;  %p695_p10 = scmp.ne.s32.totalorder %s1020_s8, %s694_s5  ;;  %s787_s15 = smov [#allocation8]  }
  0x7e   : > { %s698_s1 = sshll.u32 %s787_s15, 4  ;;  %s699_s1 = int_to_ptr.vmem [resolvable:$false] %s698_s1 }
  0x7f   : > { %p696_p0 = pnand %p695_p10, %p1101_p13  ;;  %s700_s6 = scalar_lea.vmem %s699_s1, 512 }
  0x80   : > { %518 = vmatmul.mubr.msk.f32.vlgmr.msra.gmra.mrb[0].mxu0 %vm270_vm0, %v260_v4  ;;  %p701_p3 = scmp.lt.s32.totalorder %s1020_s8, %s699_s1  ;;  %p702_p1 = scmp.lt.s32.totalorder %s700_s6, %s694_s5 }
  0x81   : > { %p697_p7 = pneg %p696_p0 }
  0x82   : > { %p703_p4 = por %p702_p1, %p701_p3 }
  0x84   : > { %p704_p2 = pnand %p703_p4, %p697_p7 }
 0x153   : > { %v519_v6 = vpop.f32.mrb[0].mxu0 }
 0x154   : > { %v349_v7 = vadd.f32 %v519_v6, %v499_v5  ;;  %v343_v8 = vpop.f32.mrb[1].mxu0 }
 0x155   : > { %v344_v9 = vadd.f32 %v499_v5, %v343_v8 }
 0x156   : > { %354 = vst.msk [vmem:[%s256_s28 + $0x8] sm:$0xff] %vm352_vm1, %v349_v7 }
 0x157   : > { %353 = vst.msk [vmem:[%s256_s28] sm:$0xff] %vm352_vm1, %v344_v9 }
 0x158   : > { %707 = shalt.err (!%p704_p2)
}
 0x159   : > { %s708_s21 = scalar_lea.hbm %s1025_s23, 256  ;;  %s712_s19 = scalar_lea.hbm %s1077_s3, 512 }
 0x15a   : > { %p709_p5 = scmp.ne.s32.totalorder %s1025_s23, %s708_s21  ;;  %p713_p6 = scmp.lt.u32.totalorder %s1025_s23, %s1077_s3 }
 0x15b   : > { %p714_p8 = scmp.lt.u32.totalorder %s712_s19, %s708_s21  ;;  %p716_p10 = scmp.lt.u32.totalorder %s708_s21, %s1025_s23 }
 0x15c   : > { %p710_p12 = pnand %p709_p5, %p1101_p13 }
 0x15d   : > { %p715_p11 = por %p714_p8, %p713_p6 }
 0x15e   : > { %p711_p9 = pneg %p710_p12 }
 0x15f   : > { %p717_p0 = por %p716_p10, %p715_p11 }
 0x161   : > { %p718_p7 = pnand %p717_p0, %p711_p9 }
 0x163   : > { %721 = shalt.err (!%p718_p7)
}
 0x164   : > { %s788_s28 = smov 128   ;;  %s789_s10 = smov 8  }
 0x165   : > { %532 = dma.vmem_to_hbm [thread:$0]  (%p1101_p13), %s1020_s8, 256, %s1025_s23, %s356_s22, %s788_s28, %s788_s28, %s789_s10  }
 0x166 PF: > { %s386_s7 = sand.u32 1, %s760_s12   ;;  %p1102_p3 = scmp.ne.s32.totalorder %s1091_s4, 0 }
 0x167   : > { %p1103_p1 = scmp.ge.s32.totalorder %s780_s17, 2  ;;  %s387_s9 = scalar_lea.sflag [#allocation4], %s386_s7 }
 0x169   : > { %p546_p4 = pnand %p1103_p1, %p1102_p3 }
 0x16b   : > { %755 = dma.done.wait (!%p546_p4), %s387_s9, 256  }
 0x16c   : > { %757 = vsyncadd (!%p546_p4), %s387_s9, 4294967040  ;;  %s20_s17 = sadd.s32 1, %s780_s17   ;;  %s1104_s12 = smov %s764_s13 }
 0x16d   : > { %p17_p2 = scmp.ge.s32.totalorder %s20_s17, 4   ;;  %s1105_s13 = smov %s768_s14 }
 0x16e   : > { %s1106_s14 = smov %s861_s24  ;;  %s1107_s15 = smov %s776_s16 }
 0x16f   : > { %s1108_s16 = smov %s1110_s18  ;;  %19 = sbr.rel (!%p17_p2) target bundleno = 9 (0x9), region = 94 }
 0x176   :  { %392 = vsyncpa [#allocation3], 1 }
 0x177   :  { %394 = vsyncpa [#allocation3 + $0x1], 1 }
 0x178   :  { %395 = vsyncpa [#allocation6], 1 }
 0x179   :  { %397 = vsyncpa [#allocation6 + $0x1], 1 }
 0x17a   :  { %398 = vsyncpa [#allocation4], 1 }
 0x17b   :  { %400 = vsyncpa [#allocation4 + $0x1], 1 }

</bundles_post_ra>
